<compile_context>
chip_gen: v7x
topology: tpu7x:2x2x1
jax: 0.10.0
libtpu: 0.0.40
codegen_flags: <defaults>
</compile_context>

<pallas_src>
import math
from functools import partial, lru_cache

import jax
import jax.numpy as jnp
from jax import lax
from jax.experimental import pallas as pl
from jax.experimental.pallas import tpu as pltpu

# ---- static module config (constructor args of SelfAttentionLayer) ----
X_DIM = 32        # x_dim
ATTEN_DIM = 32    # atten_dim
N_HEADS = 4       # n_heads (atten_dim % n_heads == 0)
HEAD_DIM = ATTEN_DIM // N_HEADS
FFN_DIM = 64      # ffn_dim
X_START = 4
EPS = 1e-5        # nn.LayerNorm default eps
# dropout=0, mask=False (module defaults)
# TODO(synk): the mask=True (causal) branch of scaled_dot_product_attention is
# not implemented; the module default (mask=False) is reproduced exactly.


@lru_cache(maxsize=None)
def _pick_tiling():
    """(max slabs per grid step, scoped-VMEM limit), tuned per TPU generation."""
    tbl_max, vmem_limit = 512, 48 * 1024 * 1024            # safe for v7x (64 MiB/TC)
    try:
        cap = int(pltpu.get_tpu_info().vmem_capacity_bytes)
        if cap >= 100 * 1024 * 1024:                        # v5e / v6e: 128 MiB VMEM
            tbl_max, vmem_limit = 1024, 80 * 1024 * 1024
    except Exception:
        pass
    return tbl_max, vmem_limit


def _layer_norm(y, gamma, beta):
    mean = jnp.mean(y, axis=-1, keepdims=True)
    var = jnp.mean((y - mean) ** 2, axis=-1, keepdims=True)
    return (y - mean) * lax.rsqrt(var + EPS) * gamma + beta


def _sal_kernel(x_ref, wqkv_ref, wd_ref, w1_ref, w2_ref, kvmask_ref, vecs_ref,
                o_ref, *, x_start):
    f32 = jnp.float32
    xb = x_ref[...]                                   # (TBL, S, Dt), native dtype
    tbl, s, dt = xb.shape
    rows = tbl * s
    n = N_HEADS * s                                   # block-diag "key" axis

    # packed bias / layernorm vectors (one (8, 96) array, see wrapper)
    vec = vecs_ref[...]
    b_qkv = vec[0:1, :3 * ATTEN_DIM]
    b_d   = vec[1:2, :X_DIM]
    g1    = vec[2:3, :X_DIM]
    be1   = vec[3:4, :X_DIM]
    b_f1  = vec[4:5, :FFN_DIM]
    b_f2  = vec[5:6, :X_DIM]
    g2    = vec[6:7, :X_DIM]
    be2   = vec[7:8, :X_DIM]

    kv_mask = kvmask_ref[...]                         # (n, 2*ATTEN_DIM), hoisted
    d_mask = kv_mask[:, :ATTEN_DIM]                   # (n, ATTEN_DIM) head-sum mask

    # slice the 32 feature columns the layer operates on; f32 math, native IO
    x = xb.reshape(rows, dt)[:, x_start:x_start + X_DIM].astype(f32)   # (R, 32)

    # fused QKV projection (1/sqrt(head_dim) pre-folded into the q columns)
    qkv = jnp.dot(x, wqkv_ref[...], preferred_element_type=f32) + b_qkv
    q3 = qkv[:, :ATTEN_DIM].reshape(tbl, s, ATTEN_DIM)
    kv3 = qkv[:, ATTEN_DIM:].reshape(tbl, s, 2 * ATTEN_DIM)   # K|V stacked in lanes

    # ---- block-diagonal multi-head layout ----
    # kv_bd[b, h*S+j, c] = {k|v}3[b, j, c] iff head(c) == h, else 0.
    # Built with ONE broadcast over heads and ONE fused mask multiply.
    kv_bd = (jnp.broadcast_to(kv3[:, None], (tbl, N_HEADS, s, 2 * ATTEN_DIM))
             .reshape(tbl, n, 2 * ATTEN_DIM) * kv_mask)
    k_bd = kv_bd[..., :ATTEN_DIM]
    v_bd = kv_bd[..., ATTEN_DIM:]

    # scores[b, s, h*S+j] = <q_h[s], k_h[j]> / sqrt(head_dim), all heads at once
    scores = jnp.einsum('bsc,bnc->bsn', q3, k_bd,
                        preferred_element_type=f32)            # (TBL, S, n)

    # per-head max shift (robust: no cross-head underflow of the denominator)
    m_parts = [jnp.max(scores[..., h * s:(h + 1) * s], axis=-1, keepdims=True)
               for h in range(N_HEADS)]
    m_full = jnp.concatenate(
        [jnp.broadcast_to(m, (tbl, s, s)) for m in m_parts], axis=-1)
    e = jnp.exp(scores - m_full)                               # (TBL, S, n)

    # deferred softmax normalization: un-normalized PV, then one recip-multiply
    denom = jnp.dot(e.reshape(rows, n), d_mask,
                    preferred_element_type=f32)                # (R, 32)
    attn_un = jnp.einsum('bsn,bnc->bsc', e, v_bd,
                         preferred_element_type=f32).reshape(rows, ATTEN_DIM)
    attn = attn_un * pl.reciprocal(denom)

    # output projection + residual + LayerNorm 1
    attn_out = jnp.dot(attn, wd_ref[...], preferred_element_type=f32) + b_d
    out1 = _layer_norm(x + attn_out, g1, be1)

    # position-wise FFN + residual + LayerNorm 2
    h1 = jnp.maximum(
        jnp.dot(out1, w1_ref[...], preferred_element_type=f32) + b_f1, 0.0)
    ffn = jnp.dot(h1, w2_ref[...], preferred_element_type=f32) + b_f2
    out2 = _layer_norm(out1 + ffn, g2, be2).reshape(tbl, s, X_DIM)

    # splice: copy the full slab through, then overwrite the 32 computed lanes
    if x_start > 0 or x_start + X_DIM < dt:
        o_ref[...] = xb
    o_ref[:, :, x_start:x_start + X_DIM] = out2.astype(o_ref.dtype)


def _pack_params(params):
    (wq, bq, wk, bk, wv, bv, wd, bd,
     g1, be1, w1, bf1, w2, bf2, g2, be2) = params
    scale = 1.0 / math.sqrt(HEAD_DIM)                 # folded into Wq / bq
    wqkv = jnp.concatenate([wq * scale, wk, wv], axis=1).astype(jnp.float32)
    bqkv = jnp.concatenate(
        [bq.reshape(-1) * scale, bk.reshape(-1), bv.reshape(-1)])

    def _row(v, width=3 * ATTEN_DIM):
        v = v.reshape(-1).astype(jnp.float32)
        return jnp.pad(v, (0, width - v.shape[0]))

    vecs = jnp.stack([_row(bqkv), _row(bd), _row(g1), _row(be1),
                      _row(bf1), _row(bf2), _row(g2), _row(be2)])   # (8, 96)
    return (wqkv, wd.astype(jnp.float32), w1.astype(jnp.float32),
            w2.astype(jnp.float32), vecs)


@partial(jax.jit, static_argnames=("x_start", "dim"))
def self_attention_layer(x, params, x_start=X_START, dim=-2):
    """Pallas forward of SelfAttentionLayer. x: (B, L, S, D_total)."""
    wqkv, wd_, w1_, w2_, vecs = _pack_params(params)

    x_t = jnp.swapaxes(x, dim, -2)                    # identity for dim=-2
    lead = x_t.shape[:-2]
    S, Dt = x_t.shape[-2], x_t.shape[-1]
    N = 1
    for d_ in lead:
        N *= int(d_)
    xs = x_t.reshape(N, S, Dt)

    # hoisted block-diagonal head mask for the stacked K|V lanes: (N_HEADS*S, 64)
    n_head = jnp.arange(N_HEADS * S, dtype=jnp.int32) // S
    c_head = (jnp.arange(2 * ATTEN_DIM, dtype=jnp.int32) % ATTEN_DIM) // HEAD_DIM
    kv_mask = (n_head[:, None] == c_head[None, :]).astype(jnp.float32)

    tbl_max, vmem_limit = _pick_tiling()
    # grid length >= 2 so dimension_semantics=("parallel",) can shard the grid
    # across both v7x TensorCores; one extra ~0.35us step is noise on 1-TC chips.
    tbl = max(1, min(tbl_max, pl.cdiv(N, 2)))
    grid = (pl.cdiv(N, tbl),)

    kernel = partial(_sal_kernel, x_start=x_start)

    out = pl.pallas_call(
        kernel,
        out_shape=jax.ShapeDtypeStruct((N, S, Dt), x.dtype),   # native-dtype IO
        grid=grid,
        in_specs=[
            pl.BlockSpec((tbl, S, Dt), lambda i: (i, 0, 0)),
            pl.BlockSpec(wqkv.shape, lambda i: (0, 0)),
            pl.BlockSpec(wd_.shape, lambda i: (0, 0)),
            pl.BlockSpec(w1_.shape, lambda i: (0, 0)),
            pl.BlockSpec(w2_.shape, lambda i: (0, 0)),
            pl.BlockSpec(kv_mask.shape, lambda i: (0, 0)),
            pl.BlockSpec(vecs.shape, lambda i: (0, 0)),
        ],
        out_specs=pl.BlockSpec((tbl, S, Dt), lambda i: (i, 0, 0)),
        input_output_aliases={0: 0},      # output reuses x's HBM allocation
        compiler_params=pltpu.CompilerParams(
            dimension_semantics=("parallel",),
            vmem_limit_bytes=vmem_limit),
    )(xs, wqkv, wd_, w1_, w2_, kv_mask, vecs)

    out = out.reshape(x_t.shape)
    return jnp.swapaxes(out, dim, -2)


# -------- pure-JAX reference (for correctness check only) --------
def reference(x, params, x_start=X_START, dim=-2):
    (wq, bq, wk, bk, wv, bv, wd, bd, g1, be1, w1, bf1, w2, bf2, g2, be2) = params
    x = x.astype(jnp.float32)
    x_t = jnp.swapaxes(x, dim, -2)
    xs = x_t[..., x_start:x_start + X_DIM]
    B, L, S, D = xs.shape
    z = xs.reshape(B * L, S, D)
    q = z @ wq + bq
    k = z @ wk + bk
    v = z @ wv + bv

    def split(t):
        return jnp.swapaxes(t.reshape(B * L, S, N_HEADS, HEAD_DIM), 1, 2)

    qh, kh, vh = split(q), split(k), split(v)
    s = jnp.einsum('bhqd,bhkd->bhqk', qh, kh) / math.sqrt(HEAD_DIM)
    w = jax.nn.softmax(s, axis=-1)
    o = jnp.einsum('bhqk,bhkd->bhqd', w, vh)
    o = jnp.swapaxes(o, 1, 2).reshape(B * L, S, ATTEN_DIM)
    attn_out = o @ wd + bd
    out1 = _layer_norm(z + attn_out, g1, be1)
    ffn = jnp.maximum(out1 @ w1 + bf1, 0.0) @ w2 + bf2
    out2 = _layer_norm(out1 + ffn, g2, be2)
    out2 = jnp.swapaxes(out2.reshape(B, L, S, D), dim, -2)
    return jnp.concatenate(
        [x[..., :x_start], out2, x[..., x_start + X_DIM:]], axis=-1)


def init_params(key):
    ks = jax.random.split(key, 12)

    def lin(kw, kb, fan_in, fan_out):
        w = (jax.random.normal(kw, (fan_in, fan_out), jnp.float32)
             / math.sqrt(fan_in))
        b = 0.01 * jax.random.normal(kb, (1, fan_out), jnp.float32)
        return w, b

    wq, bq = lin(ks[0], ks[1], X_DIM, ATTEN_DIM)
    wk, bk = lin(ks[2], ks[3], X_DIM, ATTEN_DIM)
    wv, bv = lin(ks[4], ks[5], X_DIM, ATTEN_DIM)
    wd, bd = lin(ks[6], ks[7], ATTEN_DIM, X_DIM)
    w1, bf1 = lin(ks[8], ks[9], X_DIM, FFN_DIM)
    w2, bf2 = lin(ks[10], ks[11], FFN_DIM, X_DIM)
    g1 = jnp.ones((1, X_DIM), jnp.float32)   # nn.LayerNorm defaults
    be1 = jnp.zeros((1, X_DIM), jnp.float32)
    g2 = jnp.ones((1, X_DIM), jnp.float32)
    be2 = jnp.zeros((1, X_DIM), jnp.float32)
    return (wq, bq, wk, bk, wv, bv, wd, bd,
            g1, be1, w1, bf1, w2, bf2, g2, be2)


if __name__ == "__main__":
    key = jax.random.PRNGKey(0)
    kx, kp = jax.random.split(key)
    B, L, S, D_TOTAL = 2, 2, 8, 40            # D_TOTAL >= X_START + X_DIM
    x = jax.random.normal(kx, (B, L, S, D_TOTAL), jnp.float32)
    params = init_params(kp)

    ref = jax.block_until_ready(reference(x, params, x_start=X_START, dim=-2))

    out = self_attention_layer(x, params, x_start=X_START, dim=-2)
    out = jax.block_until_ready(out)

    assert out.shape == (B, L, S, D_TOTAL), out.shape
    err = float(jnp.max(jnp.abs(out - ref)))
    assert jnp.allclose(out, ref, atol=1e-4, rtol=1e-4), err
    print("KERNEL_OK")
</pallas_src>

<mosaic_0001>
module attributes {stable_mosaic.version = 11 : i64} {
  func.func @_sal_kernel(%arg0: i32, %arg1: memref<2x8x40xf32, #tpu.memory_space<vmem>>, %arg2: memref<32x96xf32, #tpu.memory_space<vmem>>, %arg3: memref<32x32xf32, #tpu.memory_space<vmem>>, %arg4: memref<32x64xf32, #tpu.memory_space<vmem>>, %arg5: memref<64x32xf32, #tpu.memory_space<vmem>>, %arg6: memref<32x64xf32, #tpu.memory_space<vmem>>, %arg7: memref<8x96xf32, #tpu.memory_space<vmem>>, %arg8: memref<2x8x40xf32, #tpu.memory_space<vmem>>) attributes {dimension_semantics = [#tpu.dimension_semantics<parallel>], iteration_bounds = array<i64: 2>, scalar_prefetch = 0 : i64, scratch_operands = 0 : i64, tpu.core_type = #tpu.core_type<tc>, window_params = [{transform_indices = @transform_0, window_bounds = array<i64: 2, 8, 40>}, {pipeline_mode = #tpu.pipeline_mode<synchronous>, transform_indices = @transform_1, window_bounds = array<i64: 32, 96>}, {pipeline_mode = #tpu.pipeline_mode<synchronous>, transform_indices = @transform_2, window_bounds = array<i64: 32, 32>}, {pipeline_mode = #tpu.pipeline_mode<synchronous>, transform_indices = @transform_3, window_bounds = array<i64: 32, 64>}, {pipeline_mode = #tpu.pipeline_mode<synchronous>, transform_indices = @transform_4, window_bounds = array<i64: 64, 32>}, {pipeline_mode = #tpu.pipeline_mode<synchronous>, transform_indices = @transform_5, window_bounds = array<i64: 32, 64>}, {pipeline_mode = #tpu.pipeline_mode<synchronous>, transform_indices = @transform_6, window_bounds = array<i64: 8, 96>}, {transform_indices = @transform_7, window_bounds = array<i64: 2, 8, 40>}]} {
    %c0 = arith.constant 0 : index
    %c0_0 = arith.constant 0 : index
    %c0_1 = arith.constant 0 : index
    %0 = vector.load %arg1[%c0, %c0_0, %c0_1] : memref<2x8x40xf32, #tpu.memory_space<vmem>>, vector<2x8x40xf32>
    %c0_2 = arith.constant 0 : index
    %c0_3 = arith.constant 0 : index
    %1 = vector.load %arg7[%c0_2, %c0_3] : memref<8x96xf32, #tpu.memory_space<vmem>>, vector<8x96xf32>
    %2 = vector.extract_strided_slice %1 {offsets = [0, 0], sizes = [1, 96], strides = [1, 1]} : vector<8x96xf32> to vector<1x96xf32>
    %3 = vector.extract_strided_slice %1 {offsets = [1, 0], sizes = [1, 32], strides = [1, 1]} : vector<8x96xf32> to vector<1x32xf32>
    %4 = vector.extract_strided_slice %1 {offsets = [2, 0], sizes = [1, 32], strides = [1, 1]} : vector<8x96xf32> to vector<1x32xf32>
    %5 = vector.extract_strided_slice %1 {offsets = [3, 0], sizes = [1, 32], strides = [1, 1]} : vector<8x96xf32> to vector<1x32xf32>
    %6 = vector.extract_strided_slice %1 {offsets = [4, 0], sizes = [1, 64], strides = [1, 1]} : vector<8x96xf32> to vector<1x64xf32>
    %7 = vector.extract_strided_slice %1 {offsets = [5, 0], sizes = [1, 32], strides = [1, 1]} : vector<8x96xf32> to vector<1x32xf32>
    %8 = vector.extract_strided_slice %1 {offsets = [6, 0], sizes = [1, 32], strides = [1, 1]} : vector<8x96xf32> to vector<1x32xf32>
    %9 = vector.extract_strided_slice %1 {offsets = [7, 0], sizes = [1, 32], strides = [1, 1]} : vector<8x96xf32> to vector<1x32xf32>
    %c0_4 = arith.constant 0 : index
    %c0_5 = arith.constant 0 : index
    %10 = vector.load %arg6[%c0_4, %c0_5] : memref<32x64xf32, #tpu.memory_space<vmem>>, vector<32x64xf32>
    %11 = vector.extract_strided_slice %10 {offsets = [0, 0], sizes = [32, 32], strides = [1, 1]} : vector<32x64xf32> to vector<32x32xf32>
    %12 = vector.shape_cast %0 : vector<2x8x40xf32> to vector<16x40xf32>
    %13 = vector.extract_strided_slice %12 {offsets = [0, 4], sizes = [16, 32], strides = [1, 1]} : vector<16x40xf32> to vector<16x32xf32>
    %c0_6 = arith.constant 0 : index
    %c0_7 = arith.constant 0 : index
    %14 = vector.load %arg2[%c0_6, %c0_7] : memref<32x96xf32, #tpu.memory_space<vmem>>, vector<32x96xf32>
    %cst = arith.constant dense<0.000000e+00> : vector<16x96xf32>
    %15 = tpu.matmul %13, %14, %cst {dimension_numbers = #tpu.dot_dimension_numbers<[1], [0], [0], [1], [0, 0, 1, 1], [], []>} : vector<16x32xf32>, vector<32x96xf32>, vector<16x96xf32> -> vector<16x96xf32>
    %16 = vector.broadcast %2 : vector<1x96xf32> to vector<16x96xf32>
    %17 = arith.addf %15, %16 : vector<16x96xf32>
    %18 = vector.extract_strided_slice %17 {offsets = [0, 0], sizes = [16, 32], strides = [1, 1]} : vector<16x96xf32> to vector<16x32xf32>
    %19 = vector.shape_cast %18 : vector<16x32xf32> to vector<2x8x32xf32>
    %20 = vector.extract_strided_slice %17 {offsets = [0, 32], sizes = [16, 64], strides = [1, 1]} : vector<16x96xf32> to vector<16x64xf32>
    %21 = vector.shape_cast %20 : vector<16x64xf32> to vector<2x8x64xf32>
    %22 = vector.shape_cast %21 : vector<2x8x64xf32> to vector<2x1x8x64xf32>
    %23 = vector.shape_cast %22 : vector<2x1x8x64xf32> to vector<2x1x8x64xf32>
    %24 = vector.broadcast %23 : vector<2x1x8x64xf32> to vector<2x4x8x64xf32>
    %25 = vector.shape_cast %24 : vector<2x4x8x64xf32> to vector<2x32x64xf32>
    %26 = vector.shape_cast %10 : vector<32x64xf32> to vector<1x32x64xf32>
    %27 = vector.broadcast %26 : vector<1x32x64xf32> to vector<2x32x64xf32>
    %28 = arith.mulf %25, %27 : vector<2x32x64xf32>
    %29 = vector.extract_strided_slice %28 {offsets = [0, 0, 0], sizes = [2, 32, 32], strides = [1, 1, 1]} : vector<2x32x64xf32> to vector<2x32x32xf32>
    %30 = vector.extract_strided_slice %28 {offsets = [0, 0, 32], sizes = [2, 32, 32], strides = [1, 1, 1]} : vector<2x32x64xf32> to vector<2x32x32xf32>
    "tpu.trace_start"() <{level = 10 : i32, message = "bsc,bnc->bsn"}> : () -> ()
    %cst_8 = arith.constant dense<0.000000e+00> : vector<2x8x32xf32>
    %31 = tpu.matmul %19, %29, %cst_8 {dimension_numbers = #tpu.dot_dimension_numbers<[2], [2], [1], [1], [0, 0, 0, 1, 1, 1], [0], [0]>} : vector<2x8x32xf32>, vector<2x32x32xf32>, vector<2x8x32xf32> -> vector<2x8x32xf32>
    "tpu.trace_stop"() : () -> ()
    %32 = vector.extract_strided_slice %31 {offsets = [0, 0, 0], sizes = [2, 8, 8], strides = [1, 1, 1]} : vector<2x8x32xf32> to vector<2x8x8xf32>
    %cst_9 = arith.constant dense<0xFF800000> : vector<2x8xf32>
    %33 = vector.multi_reduction <maximumf>, %32, %cst_9 [2] : vector<2x8x8xf32> to vector<2x8xf32>
    %34 = vector.shape_cast %33 : vector<2x8xf32> to vector<2x8x1xf32>
    %35 = vector.extract_strided_slice %31 {offsets = [0, 0, 8], sizes = [2, 8, 8], strides = [1, 1, 1]} : vector<2x8x32xf32> to vector<2x8x8xf32>
    %cst_10 = arith.constant dense<0xFF800000> : vector<2x8xf32>
    %36 = vector.multi_reduction <maximumf>, %35, %cst_10 [2] : vector<2x8x8xf32> to vector<2x8xf32>
    %37 = vector.shape_cast %36 : vector<2x8xf32> to vector<2x8x1xf32>
    %38 = vector.extract_strided_slice %31 {offsets = [0, 0, 16], sizes = [2, 8, 8], strides = [1, 1, 1]} : vector<2x8x32xf32> to vector<2x8x8xf32>
    %cst_11 = arith.constant dense<0xFF800000> : vector<2x8xf32>
    %39 = vector.multi_reduction <maximumf>, %38, %cst_11 [2] : vector<2x8x8xf32> to vector<2x8xf32>
    %40 = vector.shape_cast %39 : vector<2x8xf32> to vector<2x8x1xf32>
    %41 = vector.extract_strided_slice %31 {offsets = [0, 0, 24], sizes = [2, 8, 8], strides = [1, 1, 1]} : vector<2x8x32xf32> to vector<2x8x8xf32>
    %cst_12 = arith.constant dense<0xFF800000> : vector<2x8xf32>
    %42 = vector.multi_reduction <maximumf>, %41, %cst_12 [2] : vector<2x8x8xf32> to vector<2x8xf32>
    %43 = vector.shape_cast %42 : vector<2x8xf32> to vector<2x8x1xf32>
    %44 = vector.shape_cast %34 : vector<2x8x1xf32> to vector<2x8x1xf32>
    %45 = vector.broadcast %44 : vector<2x8x1xf32> to vector<2x8x8xf32>
    %46 = vector.shape_cast %37 : vector<2x8x1xf32> to vector<2x8x1xf32>
    %47 = vector.broadcast %46 : vector<2x8x1xf32> to vector<2x8x8xf32>
    %48 = vector.shape_cast %40 : vector<2x8x1xf32> to vector<2x8x1xf32>
    %49 = vector.broadcast %48 : vector<2x8x1xf32> to vector<2x8x8xf32>
    %50 = vector.shape_cast %43 : vector<2x8x1xf32> to vector<2x8x1xf32>
    %51 = vector.broadcast %50 : vector<2x8x1xf32> to vector<2x8x8xf32>
    %52 = tpu.concatenate %45, %47, %49, %51 in 2 : vector<2x8x8xf32>, vector<2x8x8xf32>, vector<2x8x8xf32>, vector<2x8x8xf32> -> vector<2x8x32xf32>
    %53 = arith.subf %31, %52 : vector<2x8x32xf32>
    %54 = math.exp %53 : vector<2x8x32xf32>
    %55 = vector.shape_cast %54 : vector<2x8x32xf32> to vector<16x32xf32>
    %cst_13 = arith.constant dense<0.000000e+00> : vector<16x32xf32>
    %56 = tpu.matmul %55, %11, %cst_13 {dimension_numbers = #tpu.dot_dimension_numbers<[1], [0], [0], [1], [0, 0, 1, 1], [], []>} : vector<16x32xf32>, vector<32x32xf32>, vector<16x32xf32> -> vector<16x32xf32>
    "tpu.trace_start"() <{level = 10 : i32, message = "bsn,bnc->bsc"}> : () -> ()
    %cst_14 = arith.constant dense<0.000000e+00> : vector<2x8x32xf32>
    %57 = tpu.matmul %54, %30, %cst_14 {dimension_numbers = #tpu.dot_dimension_numbers<[2], [1], [1], [2], [0, 0, 0, 1, 1, 2], [0], [0]>} : vector<2x8x32xf32>, vector<2x32x32xf32>, vector<2x8x32xf32> -> vector<2x8x32xf32>
    "tpu.trace_stop"() : () -> ()
    %58 = vector.shape_cast %57 : vector<2x8x32xf32> to vector<16x32xf32>
    %59 = tpu.reciprocal %56 : vector<16x32xf32> -> vector<16x32xf32>
    %60 = arith.mulf %58, %59 : vector<16x32xf32>
    %c0_15 = arith.constant 0 : index
    %c0_16 = arith.constant 0 : index
    %61 = vector.load %arg3[%c0_15, %c0_16] : memref<32x32xf32, #tpu.memory_space<vmem>>, vector<32x32xf32>
    %cst_17 = arith.constant dense<0.000000e+00> : vector<16x32xf32>
    %62 = tpu.matmul %60, %61, %cst_17 {dimension_numbers = #tpu.dot_dimension_numbers<[1], [0], [0], [1], [0, 0, 1, 1], [], []>} : vector<16x32xf32>, vector<32x32xf32>, vector<16x32xf32> -> vector<16x32xf32>
    %63 = vector.broadcast %3 : vector<1x32xf32> to vector<16x32xf32>
    %64 = arith.addf %62, %63 : vector<16x32xf32>
    %65 = arith.addf %13, %64 : vector<16x32xf32>
    %cst_18 = arith.constant dense<0.000000e+00> : vector<16xf32>
    %66 = vector.multi_reduction <add>, %65, %cst_18 [1] : vector<16x32xf32> to vector<16xf32>
    %67 = vector.shape_cast %66 : vector<16xf32> to vector<16x1xf32>
    %cst_19 = arith.constant 3.200000e+01 : f32
    %68 = vector.broadcast %cst_19 : f32 to vector<16x1xf32>
    %69 = arith.divf %67, %68 : vector<16x1xf32>
    %70 = vector.broadcast %69 : vector<16x1xf32> to vector<16x32xf32>
    %71 = arith.subf %65, %70 : vector<16x32xf32>
    %72 = arith.mulf %71, %71 : vector<16x32xf32>
    %cst_20 = arith.constant dense<0.000000e+00> : vector<16xf32>
    %73 = vector.multi_reduction <add>, %72, %cst_20 [1] : vector<16x32xf32> to vector<16xf32>
    %74 = vector.shape_cast %73 : vector<16xf32> to vector<16x1xf32>
    %cst_21 = arith.constant 3.200000e+01 : f32
    %75 = vector.broadcast %cst_21 : f32 to vector<16x1xf32>
    %76 = arith.divf %74, %75 : vector<16x1xf32>
    %77 = vector.broadcast %69 : vector<16x1xf32> to vector<16x32xf32>
    %78 = arith.subf %65, %77 : vector<16x32xf32>
    %cst_22 = arith.constant 9.99999974E-6 : f32
    %79 = vector.broadcast %cst_22 : f32 to vector<16x1xf32>
    %80 = arith.addf %76, %79 : vector<16x1xf32>
    %81 = math.rsqrt %80 : vector<16x1xf32>
    %82 = vector.broadcast %81 : vector<16x1xf32> to vector<16x32xf32>
    %83 = arith.mulf %78, %82 : vector<16x32xf32>
    %84 = vector.broadcast %4 : vector<1x32xf32> to vector<16x32xf32>
    %85 = arith.mulf %83, %84 : vector<16x32xf32>
    %86 = vector.broadcast %5 : vector<1x32xf32> to vector<16x32xf32>
    %87 = arith.addf %85, %86 : vector<16x32xf32>
    %c0_23 = arith.constant 0 : index
    %c0_24 = arith.constant 0 : index
    %88 = vector.load %arg4[%c0_23, %c0_24] : memref<32x64xf32, #tpu.memory_space<vmem>>, vector<32x64xf32>
    %cst_25 = arith.constant dense<0.000000e+00> : vector<16x64xf32>
    %89 = tpu.matmul %87, %88, %cst_25 {dimension_numbers = #tpu.dot_dimension_numbers<[1], [0], [0], [1], [0, 0, 1, 1], [], []>} : vector<16x32xf32>, vector<32x64xf32>, vector<16x64xf32> -> vector<16x64xf32>
    %90 = vector.broadcast %6 : vector<1x64xf32> to vector<16x64xf32>
    %91 = arith.addf %89, %90 : vector<16x64xf32>
    %cst_26 = arith.constant 0.000000e+00 : f32
    %92 = vector.broadcast %cst_26 : f32 to vector<16x64xf32>
    %93 = arith.maximumf %91, %92 : vector<16x64xf32>
    %c0_27 = arith.constant 0 : index
    %c0_28 = arith.constant 0 : index
    %94 = vector.load %arg5[%c0_27, %c0_28] : memref<64x32xf32, #tpu.memory_space<vmem>>, vector<64x32xf32>
    %cst_29 = arith.constant dense<0.000000e+00> : vector<16x32xf32>
    %95 = tpu.matmul %93, %94, %cst_29 {dimension_numbers = #tpu.dot_dimension_numbers<[1], [0], [0], [1], [0, 0, 1, 1], [], []>} : vector<16x64xf32>, vector<64x32xf32>, vector<16x32xf32> -> vector<16x32xf32>
    %96 = vector.broadcast %7 : vector<1x32xf32> to vector<16x32xf32>
    %97 = arith.addf %95, %96 : vector<16x32xf32>
    %98 = arith.addf %87, %97 : vector<16x32xf32>
    %cst_30 = arith.constant dense<0.000000e+00> : vector<16xf32>
    %99 = vector.multi_reduction <add>, %98, %cst_30 [1] : vector<16x32xf32> to vector<16xf32>
    %100 = vector.shape_cast %99 : vector<16xf32> to vector<16x1xf32>
    %cst_31 = arith.constant 3.200000e+01 : f32
    %101 = vector.broadcast %cst_31 : f32 to vector<16x1xf32>
    %102 = arith.divf %100, %101 : vector<16x1xf32>
    %103 = vector.broadcast %102 : vector<16x1xf32> to vector<16x32xf32>
    %104 = arith.subf %98, %103 : vector<16x32xf32>
    %105 = arith.mulf %104, %104 : vector<16x32xf32>
    %cst_32 = arith.constant dense<0.000000e+00> : vector<16xf32>
    %106 = vector.multi_reduction <add>, %105, %cst_32 [1] : vector<16x32xf32> to vector<16xf32>
    %107 = vector.shape_cast %106 : vector<16xf32> to vector<16x1xf32>
    %cst_33 = arith.constant 3.200000e+01 : f32
    %108 = vector.broadcast %cst_33 : f32 to vector<16x1xf32>
    %109 = arith.divf %107, %108 : vector<16x1xf32>
    %110 = vector.broadcast %102 : vector<16x1xf32> to vector<16x32xf32>
    %111 = arith.subf %98, %110 : vector<16x32xf32>
    %cst_34 = arith.constant 9.99999974E-6 : f32
    %112 = vector.broadcast %cst_34 : f32 to vector<16x1xf32>
    %113 = arith.addf %109, %112 : vector<16x1xf32>
    %114 = math.rsqrt %113 : vector<16x1xf32>
    %115 = vector.broadcast %114 : vector<16x1xf32> to vector<16x32xf32>
    %116 = arith.mulf %111, %115 : vector<16x32xf32>
    %117 = vector.broadcast %8 : vector<1x32xf32> to vector<16x32xf32>
    %118 = arith.mulf %116, %117 : vector<16x32xf32>
    %119 = vector.broadcast %9 : vector<1x32xf32> to vector<16x32xf32>
    %120 = arith.addf %118, %119 : vector<16x32xf32>
    %121 = vector.shape_cast %120 : vector<16x32xf32> to vector<2x8x32xf32>
    %c0_35 = arith.constant 0 : index
    %c0_36 = arith.constant 0 : index
    %c0_37 = arith.constant 0 : index
    %122 = vector.load %arg8[%c0_35, %c0_36, %c0_37] : memref<2x8x40xf32, #tpu.memory_space<vmem>>, vector<2x8x40xf32>
    tpu.vector_store %arg8[%c0_35, %c0_36, %c0_37], %0 {strides = array<i32>} : memref<2x8x40xf32, #tpu.memory_space<vmem>>, vector<2x8x40xf32>,
    %c0_38 = arith.constant 0 : index
    %c0_39 = arith.constant 0 : index
    %c4 = arith.constant 4 : index
    %123 = vector.load %arg8[%c0_38, %c0_39, %c4] : memref<2x8x40xf32, #tpu.memory_space<vmem>>, vector<2x8x32xf32>
    tpu.vector_store %arg8[%c0_38, %c0_39, %c4], %121 {strides = array<i32>} : memref<2x8x40xf32, #tpu.memory_space<vmem>>, vector<2x8x32xf32>,
    return
  }
  func.func @transform_0(%arg0: i32) -> (i32, i32, i32) {
    %c0_i32 = arith.constant 0 : i32
    %c0_i32_0 = arith.constant 0 : i32
    %c0_i32_1 = arith.constant 0 : i32
    return %arg0, %c0_i32, %c0_i32_0 : i32, i32, i32
  }
  func.func @transform_1(%arg0: i32) -> (i32, i32) {
    %c0_i32 = arith.constant 0 : i32
    %c0_i32_0 = arith.constant 0 : i32
    %c0_i32_1 = arith.constant 0 : i32
    return %c0_i32, %c0_i32_0 : i32, i32
  }
  func.func @transform_2(%arg0: i32) -> (i32, i32) {
    %c0_i32 = arith.constant 0 : i32
    %c0_i32_0 = arith.constant 0 : i32
    %c0_i32_1 = arith.constant 0 : i32
    return %c0_i32, %c0_i32_0 : i32, i32
  }
  func.func @transform_3(%arg0: i32) -> (i32, i32) {
    %c0_i32 = arith.constant 0 : i32
    %c0_i32_0 = arith.constant 0 : i32
    %c0_i32_1 = arith.constant 0 : i32
    return %c0_i32, %c0_i32_0 : i32, i32
  }
  func.func @transform_4(%arg0: i32) -> (i32, i32) {
    %c0_i32 = arith.constant 0 : i32
    %c0_i32_0 = arith.constant 0 : i32
    %c0_i32_1 = arith.constant 0 : i32
    return %c0_i32, %c0_i32_0 : i32, i32
  }
  func.func @transform_5(%arg0: i32) -> (i32, i32) {
    %c0_i32 = arith.constant 0 : i32
    %c0_i32_0 = arith.constant 0 : i32
    %c0_i32_1 = arith.constant 0 : i32
    return %c0_i32, %c0_i32_0 : i32, i32
  }
  func.func @transform_6(%arg0: i32) -> (i32, i32) {
    %c0_i32 = arith.constant 0 : i32
    %c0_i32_0 = arith.constant 0 : i32
    %c0_i32_1 = arith.constant 0 : i32
    return %c0_i32, %c0_i32_0 : i32, i32
  }
  func.func @transform_7(%arg0: i32) -> (i32, i32, i32) {
    %c0_i32 = arith.constant 0 : i32
    %c0_i32_0 = arith.constant 0 : i32
    %c0_i32_1 = arith.constant 0 : i32
    return %arg0, %c0_i32, %c0_i32_0 : i32, i32, i32
  }
}

</mosaic_0001>

<bundles_post_ra>
// kernel: self_attention_layer.1
= control target key start
LH: loop header
LB: loop body
LE: loop exit
PB: predicated region body
PF: predicated region fallthrough
CT: control target
= control target key end

     0   :  { %s1767_s24 = smov 0   ;;  %s1993_s0 = inlined_call_operand.vmem [shape: f32[4,8,40], index: 0, kind: input, shape index: {}, may-alias: {0,7}]   ;;  %s1994_s1 = inlined_call_operand.vmem [shape: f32[32,96], index: 1, kind: input, shape index: {}]   ;;  %s1995_s2 = inlined_call_operand.vmem [shape: f32[32,32], index: 2, kind: input, shape index: {}]   ;;  %s1996_s3 = inlined_call_operand.vmem [shape: f32[32,64], index: 3, kind: input, shape index: {}]   ;;  %s1997_s4 = inlined_call_operand.vmem [shape: f32[64,32], index: 4, kind: input, shape index: {}]   ;;  %s1998_s5 = inlined_call_operand.vmem [shape: f32[32,64], index: 5, kind: input, shape index: {}]   ;;  %s1999_s6 = inlined_call_operand.vmem [shape: f32[8,96], index: 6, kind: input, shape index: {}]   ;;  %s2000_s7 = inlined_call_operand.vmem [shape: f32[4,8,40], index: 7, kind: output, shape index: {}, may-alias: {0,7}]  }
   0x1 LB: > { %s1369_s25 = sadd.s32 4294967295, %s1717_s24   ;;  %p1373_p0 = scmp.ge.s32.totalorder %s1717_s24, 1  ;;  %s1717_s24 = sphi %s1767_s24, %s17_s24  }
   0x2   : > { %p238_p1 = scmp.lt.s32.totalorder %s1717_s24, 3 }
   0x4   : > { %p239_p2 = pnand %p1373_p0, %p238_p1 }
   0x5   : > { %s1374_s26 = sshll.u32 (!%p239_p2), %s1369_s25, 1  ;;  %v289_v0 = vld [vmem:[%s1994_s1] sm:$0xff] (!%p239_p2)  ;;  %v290_v1 = vld [vmem:[%s1994_s1 + $0x8] sm:$0xff] (!%p239_p2)  ;;  %v291_v2 = vld [vmem:[%s1994_s1 + $0x10] sm:$0xff] (!%p239_p2)  ;;  %s1719_s16 = smov (!%p239_p2), 32   ;;  %vm1307_vm0 = vcmask (!%p239_p2), 326656   ;;  %v293_v16 = vlaneseq (!%p239_p2) }
   0x6   : > { %242 = sbr.rel (%p239_p2) target bundleno = 3187 (0xc73), region = 48  ;;  %p271_p3 = scmp.lt.s32.totalorder (!%p239_p2), %s1374_s26, 3  ;;  %v1563_v3 = vpack.c.bf16 (!%p239_p2), %v290_v1, %v289_v0  ;;  %v292_v4 = vld [vmem:[%s1994_s1 + $0x18] sm:$0xff] (!%p239_p2)  ;;  %v285_v5 = vld [vmem:[%s1998_s5] sm:$0xff] (!%p239_p2)  ;;  %v286_v6 = vld [vmem:[%s1998_s5 + $0x8] sm:$0xff] (!%p239_p2)  ;;  %vm303_vm1 = vcmask (!%p239_p2), 261120  }
   0x7   : > { %v1567_v7 = vpack.c.bf16 (!%p239_p2), %v292_v4, %v291_v2  ;;  %387 = vrot.lane.b32.xlu1 (!%p239_p2), %v285_v5, %s1719_s16  ;;  %v1793_v8 = vpack.c.bf16 (!%p239_p2), %v286_v6, %v285_v5  ;;  %v288_v9 = vld [vmem:[%s1998_s5 + $0x18] sm:$0xff] (!%p239_p2)  ;;  %v287_v10 = vld [vmem:[%s1998_s5 + $0x10] sm:$0xff] (!%p239_p2)  ;;  %s1720_s30 = smov (!%p239_p2), 124   ;;  %v1825_v18 = vshrl.u32 (!%p239_p2), %v293_v16, 7  ;;  %v1831_v21 = vld [vmem:[%s1999_s6] sm:$0xff] (!%p239_p2)  ;;  %v1721_v23 = vmov (!%p239_p2), 0.0|0.0  }
   0x8   : > { %1564 = vmatprep.subr.bf16.mxu1 (!%p239_p2), %v1563_v3  ;;  %v1801_v11 = vpack.c.bf16 (!%p239_p2), %v288_v9, %v287_v10  ;;  %1579 = vmatprep.subr.bf16.mxu0 (!%p239_p2), %v1721_v23  ;;  %s1722_s9 = smov (!%p239_p2), 96   ;;  %vm1723_vm2 = vmmov (!%p239_p2), 0   ;;  %v1724_v42 = vmov (!%p239_p2), 0.0   ;;  %s1725_s10 = smov (!%p239_p2), 64   ;;  %vm1852_vm3 = vmpackc.low (!%p239_p2), %vm303_vm1, %vm303_vm1  ;;  %vm593_vm4 = vcmask (!%p239_p2), 64512  }
   0x9   : > { %1566 = vmatpush3.bf16.msra.mxu1 (!%p239_p2), %v1563_v3  ;;  %v295_v20 = vsub.s32 (!%p239_p2), 0, %v1825_v18  ;;  %1486 = vmatprep.mubr.msk.f32.mxu0 (!%p239_p2), %vm1723_vm2, %v1724_v42  ;;  %vm600_vm5 = vcmask (!%p239_p2), 130112   ;;  %vm607_vm6 = vcmask (!%p239_p2), 195712   ;;  %vm614_vm7 = vcmask (!%p239_p2), 261312   ;;  %s1726_s19 = smov (!%p239_p2), 4  }
   0xa   : > { %1568 = vmatprep.subr.bf16.mxu1 (!%p239_p2), %v1567_v7  ;;  %vm626_vm8 = vcmask (!%p239_p2), 195584   ;;  %vm623_vm9 = vcmask (!%p239_p2), 130048   ;;  %vm1153_vm10 = vcmask (!%p239_p2), 523264   ;;  %vm1310_vm11 = vcmask (!%p239_p2), 293920  }
   0xb   : > { %389 = vrot.lane.b32.xlu1 (!%p239_p2), %v286_v6, %s1719_s16  ;;  %v296_v22 = vrot.slane (!%p239_p2), %v1831_v21, %v295_v20 }
   0xd   : > { %s2004_s26 = smov (!%p271_p3, %s1374_s26), 3  ;;  %1570 = vmatpush3.bf16.msra.mxu1 %v1567_v7 }
   0xe   : > { %s1375_s21 = sshll.u32 %s2004_s26, 3  ;;  %1571 = vmatprep.subr.bf16.mxu1 %v1721_v23 }
   0xf   : > { %s274_s25 = scalar_lea.vmem %s1993_s0, %s1375_s21  ;;  %s1809_s29 = scalar_lea.vmem %s2000_s7, %s1375_s21  ;;  %393 = vrot.lane.b32.xlu1 %v288_v9, %s1719_s16 }
  0x10   : > { %v1811_v12 = vld [vmem:[%s274_s25] sm:$0xff]  ;;  %v1813_v13 = vld [vmem:[%s274_s25 + $0x8] sm:$0xff] }
  0x11   : > { %299 = vrot.lane.b32.xlu0 %v1811_v12, %s1720_s30  ;;  %1308 = vst.msk [vmem:[%s1809_s29] sm:$0xff] %vm1307_vm0, %v1811_v12  ;;  %1309 = vst.msk [vmem:[%s1809_s29 + $0x8] sm:$0xff] %vm1307_vm0, %v1813_v13 }
  0x15   : > { %301 = vrot.lane.b32.xlu0 %v1813_v13, %s1720_s30 }
  0x19   : > { %391 = vrot.lane.b32.xlu0 %v287_v10, %s1719_s16 }
  0x79   : > { %v388_v17 = vpop.permute.xlu1 %387 }
  0x7d   : > { %v390_v19 = vpop.permute.xlu1 %389 }
  0x81   : > { %v394_v24 = vpop.permute.xlu1 %393 }
  0x83   : > { %v300_v14 = vpop.permute.xlu0 %299 }
  0x84   : > { %1464 = vmatprep.mubr.msk.f32.mxu1 %vm303_vm1, %v300_v14 }
  0x87   : > { %v302_v15 = vpop.permute.xlu0 %301 }
  0x88   : > { %1465 = vmatmul.mubr.msk.f32.vlgmr.msra.gmra.mrb[0].mxu1 %vm303_vm1, %v302_v15 }
  0x89   : > { %1475 = vmatprep.mubr.msk.f32.mxu1 %vm1723_vm2, %v1724_v42 }
  0x8b   : > { %v392_v26 = vpop.permute.xlu0 %391 }
 0x15b   : > { %v1466_v25 = vpop.f32.mrb[0].mxu1 }
 0x15c   : > { %v380_v27 = vadd.f32 %v1466_v25, %v296_v22  ;;  %v374_v28 = vpop.f32.mrb[1].mxu1 }
 0x15d   : > { %v375_v29 = vadd.f32 %v374_v28, %v296_v22 }
 0x15e   : > { %v406_v30 = vmul.f32 %v394_v24, %v380_v27  ;;  %v405_v31 = vmul.f32 %v392_v26, %v380_v27  ;;  %v403_v32 = vmul.f32 %v388_v17, %v380_v27  ;;  %v404_v33 = vmul.f32 %v390_v19, %v380_v27 }
 0x15f   : > { %v402_v34 = vmul.f32 %v394_v24, %v375_v29  ;;  %v401_v35 = vmul.f32 %v392_v26, %v375_v29  ;;  %v399_v36 = vmul.f32 %v388_v17, %v375_v29  ;;  %v400_v37 = vmul.f32 %v390_v19, %v375_v29 }
 0x160   : > { %v1836_v38 = vpack.i.bf16 %v406_v30, %v405_v31  ;;  %v1838_v39 = vpack.i.bf16 %v404_v33, %v403_v32 }
 0x161   : > { %v1840_v40 = vpack.i.bf16 %v402_v34, %v401_v35  ;;  %v1655_v41 = vpack.i.bf16 %v400_v37, %v399_v36 }
 0x162   : > { %1661 = vrot.lane.b32.xlu1 %v1838_v39, %s1722_s9 }
 0x163   : > { %1656 = vrot.lane.b32.xlu0 %v1655_v41, %s1722_s9 }
 0x166   : > { %1671 = vrot.lane.b32.xlu1 %v1836_v38, %s1722_s9 }
 0x167   : > { %1666 = vrot.lane.b32.xlu0 %v1840_v40, %s1722_s9 }
 0x16a   : > { %1676 = vrot.lane.b32.xlu1 %v1655_v41, %s1725_s10 }
 0x1d4   : > { %v1662_v43 = vpop.permute.xlu1 %1661 }
 0x1d5   : > { %v1664_v44 = vunpack.i.h.bf16 %v1662_v43  ;;  %v1663_v45 = vunpack.i.l.bf16 %v1662_v43  ;;  %v1657_v46 = vpop.permute.xlu0 %1656 }
 0x1d6   : > { %v1659_v47 = vunpack.i.h.bf16 %v1657_v46  ;;  %v1658_v48 = vunpack.i.l.bf16 %v1657_v46 }
 0x1d7   : > { %v1580_v50 = vpack.c.bf16 %v1664_v44, %v1663_v45 }
 0x1d8   : > { %v1572_v51 = vpack.c.bf16 %v1659_v47, %v1658_v48  ;;  %v1672_v52 = vpop.permute.xlu1 %1671 }
 0x1d9   : > { %1582 = vmatpush3.bf16.xpose.msk.msra.mxu0 %vm1852_vm3, %v1580_v50  ;;  %v1667_v53 = vpop.permute.xlu0 %1666  ;;  %v1674_v54 = vunpack.i.h.bf16 %v1672_v52  ;;  %v1673_v55 = vunpack.i.l.bf16 %v1672_v52  ;;  %v884_v50 = vld [vmem:[%s1995_s2] sm:$0xff] }
 0x1da   : > { %1574 = vmatpush3.bf16.xpose.msk.msra.mxu1 %vm1852_vm3, %v1572_v51  ;;  %1583 = vmatprep.subr.bf16.mxu0 %v1721_v23  ;;  %v1669_v56 = vunpack.i.h.bf16 %v1667_v53  ;;  %v1668_v57 = vunpack.i.l.bf16 %v1667_v53  ;;  %v885_v51 = vld [vmem:[%s1995_s2 + $0x8] sm:$0xff] }
 0x1db   : > { %1575 = vmatprep.subr.bf16.mxu1 %v1721_v23  ;;  %v1584_v58 = vpack.c.bf16 %v1674_v54, %v1673_v55  ;;  %v1607_v52 = vpack.c.bf16 %v885_v51, %v884_v50  ;;  %v1144_v50 = vld [vmem:[%s1997_s4 + $0x18] sm:$0xff] }
 0x1dc   : > { %v1576_v59 = vpack.c.bf16 %v1669_v56, %v1668_v57  ;;  %v1677_v60 = vpop.permute.xlu1 %1676 }
 0x1dd   : > { %v1679_v61 = vunpack.i.h.bf16 %v1677_v60  ;;  %v1678_v62 = vunpack.i.l.bf16 %v1677_v60 }
 0x1df   : > { %v1596_v63 = vpack.c.bf16 %v1679_v61, %v1678_v62 }
 0x1e1   : > { %1586 = vmatpush3.bf16.xpose.msk.msra.mxu0 %vm1852_vm3, %v1584_v58 }
 0x1e2   : > { %1578 = vmatpush3.bf16.xpose.msk.msra.mxu1 %vm1852_vm3, %v1576_v59  ;;  %1595 = vmatprep.subr.bf16.mxu0 %v1721_v23 }
 0x1e3   : > { %1588 = vmatprep.subr.bf16.mxu1 %v1793_v8 }
 0x1e8   : > { %1487 = vmatmul.mubr.msk.f32.vlgmr.msra.gmra.mrb[0].mxu0 %vm303_vm1, %v380_v27 }
 0x1e9   : > { %1476 = vmatmul.mubr.msk.f32.vlgmr.msra.gmra.mrb[2].mxu1 %vm303_vm1, %v375_v29  ;;  %1597 = vmatpush3.bf16.msra.mxu0 %v1596_v63 }
 0x1ea   : > { %1598 = vmatprep.subr.bf16.mxu0 %v1721_v23  ;;  %1590 = vmatpush3.bf16.msra.mxu1 %v1793_v8 }
 0x1eb   : > { %1592 = vmatprep.subr.bf16.mxu1 %v1801_v11  ;;  %1508 = vmatprep.mubr.msk.f32.mxu0 %vm1723_vm2, %v1724_v42 }
 0x1ee   : > { %1594 = vmatpush3.bf16.msra.mxu1 %v1801_v11 }
 0x1ef   : > { %1601 = vmatprep.subr.bf16.mxu1 %v1721_v23 }
 0x2bb   : > { %v589_v0 = vpop.f32.mrb[0].mxu0 }
 0x2bc   : > { %v496_v1 = vpop.f32.mrb[2].mxu1  ;;  %v1488_v2 = vpop.f32.mrb[1].mxu0  ;;  %v597_v3 = vsel %vm593_vm4, %v589_v0, -inf  ;;  %v604_v6 = vsel %vm600_vm5, %v589_v0, -inf  ;;  %v611_v8 = vsel %vm607_vm6, %v589_v0, -inf  ;;  %v618_v11 = vsel %vm614_vm7, %v589_v0, -inf }
 0x2bd   : > { %598 = vmax.xlane.f32.xlu0 %v597_v3  ;;  %v1477_v4 = vpop.f32.mrb[3].mxu1  ;;  %v601_v5 = vsel %vm600_vm5, %v496_v1, -inf  ;;  %v608_v7 = vsel %vm607_vm6, %v496_v1, -inf  ;;  %v615_v9 = vsel %vm614_vm7, %v496_v1, -inf  ;;  %v594_v10 = vsel %vm593_vm4, %v496_v1, -inf }
 0x2be   : > { %602 = vmax.xlane.f32.xlu1 %v601_v5 }
 0x2c1   : > { %605 = vmax.xlane.f32.xlu0 %v604_v6 }
 0x2c2   : > { %609 = vmax.xlane.f32.xlu1 %v608_v7 }
 0x2c5   : > { %612 = vmax.xlane.f32.xlu0 %v611_v8 }
 0x2c6   : > { %616 = vmax.xlane.f32.xlu1 %v615_v9 }
 0x2c9   : > { %595 = vmax.xlane.f32.xlu0 %v594_v10 }
 0x2cd   : > { %619 = vmax.xlane.f32.xlu0 %v618_v11 }
 0x2d7   : > { %1686 = vrot.lane.b32.xlu1 %v1840_v40, %s1725_s10 }
 0x2db   : > { %1691 = vrot.lane.b32.xlu1 %v1836_v38, %s1725_s10 }
 0x2e3   : > { %1681 = vrot.lane.b32.xlu0 %v1838_v39, %s1725_s10 }
 0x34a   : > { %v599_v14 = vpop.xlane.xlu0 %598 }
 0x34b   : > { %v603_v15 = vpop.xlane.xlu1 %602 }
 0x34e   : > { %v606_v16 = vpop.xlane.xlu0 %605 }
 0x34f   : > { %v610_v17 = vpop.xlane.xlu1 %609  ;;  %v622_v29 = vsel %vm593_vm4, %v599_v14, %v606_v16 }
 0x352   : > { %v613_v19 = vpop.xlane.xlu0 %612 }
 0x353   : > { %v617_v20 = vpop.xlane.xlu1 %616  ;;  %v625_v31 = vsel %vm623_vm9, %v622_v29, %v613_v19  ;;  %v1038_v29 = vsub.s32 3, %v1825_v18 }
 0x356   : > { %v596_v22 = vpop.xlane.xlu0 %595 }
 0x357   : > { %v621_v24 = vsel %vm593_vm4, %v596_v22, %v603_v15  ;;  %v1687_v25 = vpop.permute.xlu1 %1686 }
 0x358   : > { %v624_v26 = vsel %vm623_vm9, %v621_v24, %v610_v17  ;;  %v1689_v27 = vunpack.i.h.bf16 %v1687_v25  ;;  %v1688_v28 = vunpack.i.l.bf16 %v1687_v25 }
 0x359   : > { %v627_v30 = vsel %vm626_vm8, %v624_v26, %v617_v20 }
 0x35a   : > { %v1599_v32 = vpack.c.bf16 %v1689_v27, %v1688_v28  ;;  %v629_v33 = vsub.f32 %v496_v1, %v627_v30  ;;  %v620_v34 = vpop.xlane.xlu0 %619  ;;  %v1039_v30 = vrot.slane %v1831_v21, %v1038_v29 }
 0x35b   : > { %v628_v35 = vsel %vm626_vm8, %v625_v31, %v620_v34  ;;  %v1692_v43 = vpop.permute.xlu1 %1691  ;;  %v1028_v31 = vsub.s32 2, %v1825_v18  ;;  %v1047_v34 = vld [vmem:[%s1996_s3 + $0x8] sm:$0xff] }
 0x35c   : > { %v631_v36 = vmul.f32 1.442695, %v629_v33  ;;  %v630_v37 = vsub.f32 %v589_v0, %v628_v35  ;;  %1600 = vmatpush3.bf16.msra.mxu0 %v1599_v32  ;;  %v1694_v46 = vunpack.i.h.bf16 %v1692_v43  ;;  %v1693_v47 = vunpack.i.l.bf16 %v1692_v43  ;;  %v1046_v33 = vld [vmem:[%s1996_s3] sm:$0xff]  ;;  %v1048_v35 = vld [vmem:[%s1996_s3 + $0x10] sm:$0xff] }
 0x35d   : > { %1608 = vmatprep.subr.bf16.mxu0 %v1607_v52  ;;  %v890_v0 = vsub.s32 1, %v1825_v18  ;;  %v1029_v32 = vrot.slane %v1831_v21, %v1028_v31 }
 0x35e   : > { %1695 = vpow2.f32 %v631_v36  ;;  %v633_v38 = vmul.f32 1.442695, %v630_v37  ;;  %v1682_v39 = vpop.permute.xlu0 %1681  ;;  %v1605_v49 = vpack.c.bf16 %v1694_v46, %v1693_v47  ;;  %v1615_v36 = vpack.c.bf16 %v1047_v34, %v1046_v33  ;;  %v1049_v37 = vld [vmem:[%s1996_s3 + $0x18] sm:$0xff]  ;;  %v1141_v46 = vld [vmem:[%s1997_s4] sm:$0xff]  ;;  %v1142_v47 = vld [vmem:[%s1997_s4 + $0x8] sm:$0xff] }
 0x35f   : > { %v1684_v40 = vunpack.i.h.bf16 %v1682_v39  ;;  %v1683_v41 = vunpack.i.l.bf16 %v1682_v39  ;;  %v891_v1 = vrot.slane %v1831_v21, %v890_v0 }
 0x360   : > { %1697 = vpow2.f32 %v633_v38  ;;  %v1619_v38 = vpack.c.bf16 %v1049_v37, %v1048_v35 }
 0x361   : > { %v1602_v48 = vpack.c.bf16 %v1684_v40, %v1683_v41 }
 0x368   : > { %v1696_v44 = vpop.eup %1695 }
 0x369   : > { %1497 = vmatprep.mubr.msk.f32.mxu1 %vm303_vm1, %v1696_v44  ;;  %1509 = vmatmul.mubr.msk.f32.vlgmr.msra.gmra.mrb[2].mxu0 %vm303_vm1, %v1696_v44 }
 0x36a   : > { %v1698_v45 = vpop.eup %1697  ;;  %1610 = vmatpush3.bf16.msra.mxu0 %v1607_v52  ;;  %v1145_v52 = vld [vmem:[%s1997_s4 + $0x20] sm:$0xff] }
 0x36b   : > { %1498 = vmatmul.mubr.msk.f32.vlgmr.msra.gmra.mrb[4].mxu1 %vm303_vm1, %v1698_v45 }
 0x36c   : > { %1603 = vmatpush3.bf16.msra.mxu1 %v1602_v48  ;;  %1519 = vmatprep.mubr.msk.f32.mxu1 %vm1723_vm2, %v1724_v42  ;;  %v886_v42 = vld [vmem:[%s1995_s2 + $0x10] sm:$0xff] }
 0x36d   : > { %1604 = vmatprep.subr.bf16.mxu1 %v1721_v23  ;;  %v887_v23 = vld [vmem:[%s1995_s2 + $0x18] sm:$0xff]  ;;  %v1143_v48 = vld [vmem:[%s1997_s4 + $0x10] sm:$0xff] }
 0x36e   : > { %v1611_v53 = vpack.c.bf16 %v887_v23, %v886_v42  ;;  %v1627_v51 = vpack.c.bf16 %v1144_v50, %v1143_v48  ;;  %v1146_v42 = vld [vmem:[%s1997_s4 + $0x28] sm:$0xff] }
 0x370   : > { %1606 = vmatpush3.bf16.msra.mxu1 %v1605_v49  ;;  %1612 = vmatprep.subr.bf16.mxu0 %v1611_v53  ;;  %v1623_v49 = vpack.c.bf16 %v1142_v47, %v1141_v46 }
 0x371   : > { %1614 = vmatpush3.bf16.msra.mxu0 %v1611_v53  ;;  %1616 = vmatprep.subr.bf16.mxu1 %v1615_v36 }
 0x372   : > { %1624 = vmatprep.subr.bf16.mxu0 %v1623_v49 }
 0x373   : > { %1520 = vmatmul.mubr.msk.f32.vlgmr.msra.gmra.mrb[6].mxu1 %vm303_vm1, %v1698_v45 }
 0x374   : > { %1618 = vmatpush3.bf16.msra.mxu1 %v1615_v36 }
 0x375   : > { %1620 = vmatprep.subr.bf16.mxu1 %v1619_v38 }
 0x378   : > { %1622 = vmatpush3.bf16.msra.mxu1 %v1619_v38 }
 0x43c   : > { %v794_v54 = vpop.f32.mrb[2].mxu0 }
 0x43d   : > { %v1510_v55 = vpop.f32.mrb[3].mxu0 }
 0x43e   : > { %v1499_v56 = vpop.f32.mrb[4].mxu1 }
 0x43f   : > { %1699 = vrcp.f32 %v1499_v56  ;;  %v707_v57 = vpop.f32.mrb[5].mxu1  ;;  %v1631_v56 = vpack.c.bf16 %v1146_v42, %v1145_v52 }
 0x440   : > { %1701 = vrcp.f32 %v707_v57 }
 0x446   : > { %v876_v58 = vpop.f32.mrb[6].mxu1 }
 0x447   : > { %v1521_v59 = vpop.f32.mrb[7].mxu1 }
 0x449   : > { %v1700_v60 = vpop.eup %1699 }
 0x44a   : > { %v1702_v61 = vpop.eup %1701  ;;  %v883_v62 = vmul.f32 %v1700_v60, %v876_v58 }
 0x44b   : > { %v882_v63 = vmul.f32 %v1702_v61, %v794_v54 }
 0x44d   : > { %1530 = vmatprep.mubr.msk.f32.mxu0 %vm303_vm1, %v882_v63 }
 0x44e   : > { %1531 = vmatmul.mubr.msk.f32.vlgmr.msra.gmra.mrb[4].mxu0 %vm303_vm1, %v883_v62 }
 0x44f   : > { %1626 = vmatpush3.bf16.msra.mxu0 %v1623_v49 }
 0x450   : > { %1628 = vmatprep.subr.bf16.mxu0 %v1627_v51 }
 0x453   : > { %1630 = vmatpush3.bf16.msra.mxu0 %v1627_v51 }
 0x454   : > { %1632 = vmatprep.subr.bf16.mxu0 %v1631_v56 }
 0x457   : > { %1634 = vmatpush3.bf16.msra.mxu0 %v1631_v56 }
 0x521   : > { %v1532_v2 = vpop.f32.mrb[4].mxu0 }
 0x522   : > { %v970_v3 = vadd.f32 %v1532_v2, %v891_v1  ;;  %v964_v4 = vpop.f32.mrb[5].mxu0  ;;  %v1148_v2 = vld [vmem:[%s1997_s4 + $0x38] sm:$0xff] }
 0x523   : > { %v965_v5 = vadd.f32 %v964_v4, %v891_v1  ;;  %v1147_v1 = vld [vmem:[%s1997_s4 + $0x30] sm:$0xff]  ;;  %v1052_v4 = vsub.s32 4, %v1825_v18 }
 0x524   : > { %977 = vrot.lane.b32.xlu1 %v970_v3, %s1726_s19  ;;  %v1635_v3 = vpack.c.bf16 %v1148_v2, %v1147_v1 }
 0x525   : > { %975 = vrot.lane.b32.xlu0 %v965_v5, %s1726_s19  ;;  %v1053_v5 = vrot.slane %v1831_v21, %v1052_v4 }
 0x526   : > { %1636 = vmatprep.subr.bf16.mxu0 %v1635_v3 }
 0x527   : > { %1638 = vmatpush3.bf16.msra.mxu0 %v1635_v3 }
 0x596   : > { %v978_v6 = vpop.permute.xlu1 %977 }
 0x597   : > { %v982_v7 = vadd.f32 %v978_v6, %v1813_v13  ;;  %v976_v8 = vpop.permute.xlu0 %975 }
 0x598   : > { %v981_v9 = vadd.f32 %v976_v8, %v1811_v12 }
 0x599   : > { %987 = vrot.lane.b32.xlu1 %v982_v7, %s1720_s30 }
 0x59a   : > { %985 = vrot.lane.b32.xlu0 %v981_v9, %s1720_s30 }
 0x60b   : > { %v988_v10 = vpop.permute.xlu1 %987 }
 0x60c   : > { %v986_v11 = vpop.permute.xlu0 %985  ;;  %v994_v14 = vsel %vm303_vm1, %v988_v10, 0.0 }
 0x60d   : > { %995 = vadd.xlane.f32.xlu1 %v994_v14  ;;  %v991_v15 = vsel %vm303_vm1, %v986_v11, 0.0  ;;  %v1151_v14 = vsub.s32 5, %v1825_v18 }
 0x60e   : > { %992 = vadd.xlane.f32.xlu0 %v991_v15 }
 0x60f   : > { %v1152_v15 = vrot.slane %v1831_v21, %v1151_v14 }
 0x69a   : > { %v996_v16 = vpop.xlane.xlu1 %995 }
 0x69b   : > { %v999_v17 = vmul.f32 0.03125, %v996_v16  ;;  %v993_v19 = vpop.xlane.xlu0 %992 }
 0x69c   : > { %v998_v20 = vmul.f32 0.03125, %v993_v19 }
 0x69d   : > { %v1001_v13 = vsub.f32 %v982_v7, %v999_v17 }
 0x69e   : > { %v1000_v22 = vsub.f32 %v981_v9, %v998_v20 }
 0x69f   : > { %v1003_v24 = vmul.f32 %v1001_v13, %v1001_v13 }
 0x6a0   : > { %v1002_v12 = vmul.f32 %v1000_v22, %v1000_v22 }
 0x6a1   : > { %1008 = vrot.lane.b32.xlu1 %v1003_v24, %s1720_s30 }
 0x6a2   : > { %1006 = vrot.lane.b32.xlu0 %v1002_v12, %s1720_s30 }
 0x713   : > { %v1009_v25 = vpop.permute.xlu1 %1008 }
 0x714   : > { %v1007_v26 = vpop.permute.xlu0 %1006  ;;  %v1015_v27 = vsel %vm303_vm1, %v1009_v25, 0.0 }
 0x715   : > { %1016 = vadd.xlane.f32.xlu1 %v1015_v27  ;;  %v1012_v28 = vsel %vm303_vm1, %v1007_v26, 0.0 }
 0x716   : > { %1013 = vadd.xlane.f32.xlu0 %v1012_v28 }
 0x726   : > { %1041 = vrot.lane.b32.xlu1 %v1039_v30, %s1726_s19 }
 0x72c   : > { %1031 = vrot.lane.b32.xlu0 %v1029_v32, %s1726_s19 }
 0x7a2   : > { %v1017_v39 = vpop.xlane.xlu1 %1016 }
 0x7a3   : > { %v1019_v40 = vmul.f32 0.03125, %v1017_v39  ;;  %v1014_v41 = vpop.xlane.xlu0 %1013 }
 0x7a4   : > { %v1018_v43 = vmul.f32 0.03125, %v1014_v41  ;;  %v1299_v41 = vsub.s32 7, %v1825_v18 }
 0x7a5   : > { %v1021_v44 = vadd.f32 1e-05, %v1019_v40 }
 0x7a6   : > { %v1020_v45 = vadd.f32 1e-05, %v1018_v43  ;;  %v1042_v58 = vpop.permute.xlu1 %1041  ;;  %v1300_v43 = vrot.slane %v1831_v21, %v1299_v41 }
 0x7a7   : > { %1703 = vrsqrt.f32 %v1021_v44  ;;  %v1032_v53 = vpop.permute.xlu0 %1031  ;;  %v1289_v44 = vsub.s32 6, %v1825_v18 }
 0x7a8   : > { %1705 = vrsqrt.f32 %v1020_v45 }
 0x7a9   : > { %v1290_v45 = vrot.slane %v1831_v21, %v1289_v44 }
 0x7b1   : > { %v1704_v23 = vpop.eup %1703 }
 0x7b2   : > { %v1706_v54 = vpop.eup %1705  ;;  %v1025_v55 = vmul.f32 %v1704_v23, %v1001_v13 }
 0x7b3   : > { %v1024_v57 = vmul.f32 %v1706_v54, %v1000_v22 }
 0x7b4   : > { %v1035_v59 = vmul.f32 %v1032_v53, %v1025_v55 }
 0x7b5   : > { %v1034_v60 = vmul.f32 %v1032_v53, %v1024_v57 }
 0x7b6   : > { %v1045_v61 = vadd.f32 %v1042_v58, %v1035_v59 }
 0x7b7   : > { %v1044_v62 = vadd.f32 %v1042_v58, %v1034_v60 }
 0x7b8   : > { %1058 = vrot.lane.b32.xlu1 %v1045_v61, %s1720_s30 }
 0x7b9   : > { %1056 = vrot.lane.b32.xlu0 %v1044_v62, %s1720_s30 }
 0x82a   : > { %v1059_v0 = vpop.permute.xlu1 %1058 }
 0x82b   : > { %v1057_v63 = vpop.permute.xlu0 %1056 }
 0x82c   : > { %1541 = vmatprep.mubr.msk.f32.mxu1 %vm303_vm1, %v1057_v63 }
 0x82d   : > { %1542 = vmatmul.mubr.msk.f32.vlgmr.msra.gmra.mrb[8].mxu1 %vm303_vm1, %v1059_v0 }
 0x900   : > { %v1543_v6 = vpop.f32.mrb[8].mxu1 }
 0x901   : > { %v1136_v7 = vadd.f32 %v1543_v6, %v1053_v5  ;;  %v1130_v8 = vpop.f32.mrb[9].mxu1 }
 0x902   : > { %v1131_v9 = vadd.f32 %v1130_v8, %v1053_v5 }
 0x903   : > { %v1140_v11 = vmax.f32 %v1136_v7, 0.0 }
 0x904   : > { %v1139_v10 = vmax.f32 %v1131_v9, 0.0 }
 0x906   : > { %1560 = vmatprep.mubr.msk.f32.mxu0 %vm1153_vm10, %v1139_v10 }
 0x907   : > { %1561 = vmatmul.mubr.msk.f32.vlgmr.msra.gmra.mrb[6].mxu0 %vm1153_vm10, %v1140_v11 }
 0x9da   : > { %v1562_v16 = vpop.f32.mrb[6].mxu0 }
 0x9db   : > { %v1232_v17 = vadd.f32 %v1562_v16, %v1152_v15  ;;  %v1226_v19 = vpop.f32.mrb[7].mxu0 }
 0x9dc   : > { %v1227_v20 = vadd.f32 %v1226_v19, %v1152_v15 }
 0x9dd   : > { %1239 = vrot.lane.b32.xlu1 %v1232_v17, %s1726_s19 }
 0x9de   : > { %1237 = vrot.lane.b32.xlu0 %v1227_v20, %s1726_s19 }
 0xa4f   : > { %v1240_v13 = vpop.permute.xlu1 %1239 }
 0xa50   : > { %v1244_v22 = vadd.f32 %v1240_v13, %v1045_v61  ;;  %v1238_v24 = vpop.permute.xlu0 %1237 }
 0xa51   : > { %v1243_v12 = vadd.f32 %v1238_v24, %v1044_v62 }
 0xa52   : > { %1249 = vrot.lane.b32.xlu1 %v1244_v22, %s1720_s30 }
 0xa53   : > { %1247 = vrot.lane.b32.xlu0 %v1243_v12, %s1720_s30 }
 0xac4   : > { %v1250_v25 = vpop.permute.xlu1 %1249 }
 0xac5   : > { %v1248_v26 = vpop.permute.xlu0 %1247  ;;  %v1256_v27 = vsel %vm303_vm1, %v1250_v25, 0.0 }
 0xac6   : > { %1257 = vadd.xlane.f32.xlu1 %v1256_v27  ;;  %v1253_v28 = vsel %vm303_vm1, %v1248_v26, 0.0 }
 0xac7   : > { %1254 = vadd.xlane.f32.xlu0 %v1253_v28 }
 0xb53   : > { %v1258_v29 = vpop.xlane.xlu1 %1257 }
 0xb54   : > { %v1260_v30 = vmul.f32 0.03125, %v1258_v29  ;;  %v1255_v31 = vpop.xlane.xlu0 %1254 }
 0xb55   : > { %v1259_v32 = vmul.f32 0.03125, %v1255_v31 }
 0xb56   : > { %v1262_v33 = vsub.f32 %v1244_v22, %v1260_v30 }
 0xb57   : > { %v1261_v34 = vsub.f32 %v1243_v12, %v1259_v32 }
 0xb58   : > { %v1264_v35 = vmul.f32 %v1262_v33, %v1262_v33 }
 0xb59   : > { %v1263_v36 = vmul.f32 %v1261_v34, %v1261_v34 }
 0xb5a   : > { %1269 = vrot.lane.b32.xlu1 %v1264_v35, %s1720_s30 }
 0xb5b   : > { %1267 = vrot.lane.b32.xlu0 %v1263_v36, %s1720_s30 }
 0xbcc   : > { %v1270_v37 = vpop.permute.xlu1 %1269 }
 0xbcd   : > { %v1268_v38 = vpop.permute.xlu0 %1267  ;;  %v1276_v39 = vsel %vm303_vm1, %v1270_v37, 0.0 }
 0xbce   : > { %1277 = vadd.xlane.f32.xlu1 %v1276_v39  ;;  %v1273_v40 = vsel %vm303_vm1, %v1268_v38, 0.0 }
 0xbcf   : > { %1274 = vadd.xlane.f32.xlu0 %v1273_v40 }
 0xbdf   : > { %1302 = vrot.lane.b32.xlu1 %v1300_v43, %s1726_s19 }
 0xbe5   : > { %1292 = vrot.lane.b32.xlu0 %v1290_v45, %s1726_s19 }
 0xc5b   : > { %v1278_v46 = vpop.xlane.xlu1 %1277 }
 0xc5c   : > { %v1280_v47 = vmul.f32 0.03125, %v1278_v46  ;;  %v1275_v48 = vpop.xlane.xlu0 %1274 }
 0xc5d   : > { %v1279_v49 = vmul.f32 0.03125, %v1275_v48 }
 0xc5e   : > { %v1282_v50 = vadd.f32 1e-05, %v1280_v47 }
 0xc5f   : > { %v1281_v51 = vadd.f32 1e-05, %v1279_v49  ;;  %v1303_v55 = vpop.permute.xlu1 %1302 }
 0xc60   : > { %1707 = vrsqrt.f32 %v1282_v50  ;;  %v1293_v42 = vpop.permute.xlu0 %1292 }
 0xc61   : > { %1709 = vrsqrt.f32 %v1281_v51 }
 0xc6a   : > { %v1708_v52 = vpop.eup %1707 }
 0xc6b   : > { %v1710_v23 = vpop.eup %1709  ;;  %v1286_v18 = vmul.f32 %v1708_v52, %v1262_v33 }
 0xc6c   : > { %v1285_v53 = vmul.f32 %v1710_v23, %v1261_v34 }
 0xc6d   : > { %v1296_v54 = vmul.f32 %v1293_v42, %v1286_v18 }
 0xc6e   : > { %v1295_v21 = vmul.f32 %v1293_v42, %v1285_v53 }
 0xc6f   : > { %v1306_v57 = vadd.f32 %v1303_v55, %v1296_v54 }
 0xc70   : > { %v1305_v56 = vadd.f32 %v1303_v55, %v1295_v21 }
 0xc71   : > { %1312 = vst.msk [vmem:[%s1809_s29 + $0x8] sm:$0xff] %vm1310_vm11, %v1306_v57 }
 0xc72   : > { %1311 = vst.msk [vmem:[%s1809_s29] sm:$0xff] %vm1310_vm11, %v1305_v56 }
 0xc73 PF: > { %s17_s24 = sadd.s32 1, %s1717_s24  }
 0xc74   : > { %p14_p4 = scmp.ge.s32.totalorder %s17_s24, 4  }
 0xc76   :  { %16 = sbr.rel (!%p14_p4) target bundleno = 1 (0x1), region = 78 }

</bundles_post_ra>
